<compile_context>
chip_gen: v5e
topology: v5e:2x2
jax: 0.10.0
libtpu: 0.0.40
codegen_flags: <defaults>
</compile_context>

<pallas_src>
import functools

import jax
import jax.numpy as jnp
from jax.experimental import pallas as pl
from jax.experimental.pallas import tpu as pltpu

_LANES = 128


def _softplus_math(x, beta):
    """Exactly the module's formula, computed in f32 and cast back."""
    xf = x.astype(jnp.float32)
    bx = beta * xf
    y = (1.0 / beta) * jnp.log1p(jnp.exp(-jnp.abs(bx))) + jnp.maximum(xf, 0.0)
    return y.astype(x.dtype)


def _softplus_kernel(x_ref, o_ref, *, beta):
    o_ref[...] = _softplus_math(x_ref[...], beta).astype(o_ref.dtype)


def _round_up(a, m):
    return (a + m - 1) // m * m


def softplus_pallas(x, beta, *, tile_rows=4096, small_input_bytes=256 * 1024):
    """Elementwise SoftPlus matching the PyTorch module's forward.

    `beta` is baked in as a static Python float (a new beta recompiles — fine
    for a module hyperparameter). Works for any nonzero beta because we
    implement the module's exact formula.
    """
    beta = float(beta)
    orig_shape = x.shape
    dtype = x.dtype
    n = x.size
    itemsize = jnp.dtype(dtype).itemsize

    # Fast path: tiny tensors — pallas_call fixed cost dominates; let XLA fuse.
    if n == 0 or n * itemsize <= small_input_bytes:
        return _softplus_math(x, beta)

    x_flat = jnp.ravel(x)
    rem = n % _LANES
    n_main = n - rem
    if n_main == 0:  # (< 128 elements) — only reachable with a tiny threshold
        return _softplus_math(x, beta)

    # dtype-scaled block sizing: keep blocks ~128 KiB .. ~2 MiB regardless of
    # element width, and keep row counts a multiple of the packed-sublane
    # granularity (8 for 4-byte, 16 for 2-byte, 32 for 1-byte dtypes).
    scale = max(1, 4 // itemsize)
    sub = 8 * scale
    max_block_rows = tile_rows * scale     # ~2 MiB / block (f32 @ 4096 rows)
    min_block_rows = 256 * scale           # ~128 KiB / block

    x_main = x_flat[:n_main] if rem else x_flat
    rows = n_main // _LANES
    x2d = x_main.reshape(rows, _LANES)

    # Grid-length policy: target ~8 steps so the "parallel" axis shards across
    # both v7x TensorCores with decent balance, floor blocks at ~128 KiB so
    # the ~0.35 us/step fixed cost stays amortized, and cap at ~2 MiB so
    # in+out double-buffering fits every generation's default scoped VMEM.
    target_grid = 8
    br = _round_up(pl.cdiv(rows, target_grid), sub)
    block_rows = min(max_block_rows, max(br, min_block_rows))
    if block_rows >= rows:
        block_rows = rows  # single full-extent block (always a legal shape)
    grid = (pl.cdiv(rows, block_rows),)

    kernel = functools.partial(_softplus_kernel, beta=beta)

    out2d = pl.pallas_call(
        kernel,
        out_shape=jax.ShapeDtypeStruct((rows, _LANES), dtype),
        grid_spec=pltpu.PrefetchScalarGridSpec(
            num_scalar_prefetch=0,
            grid=grid,
            in_specs=[pl.BlockSpec((block_rows, _LANES), lambda i: (i, 0))],
            out_specs=pl.BlockSpec((block_rows, _LANES), lambda i: (i, 0)),
        ),
        compiler_params=pltpu.CompilerParams(
            dimension_semantics=("parallel",),
        ),
    )(x2d)

    out_main = out2d.reshape(-1)
    if rem:
        tail = x_flat[n_main:]
        out_flat = jnp.concatenate([out_main, _softplus_math(tail, beta)])
        return out_flat.reshape(orig_shape)
    return out_main.reshape(orig_shape)


if __name__ == "__main__":
    key = jax.random.PRNGKey(0)
    beta = 2.0

    # Shape consistent with the module's conv-activation usage.
    x = jax.random.normal(key, (2, 4, 16, 16), dtype=jnp.float32) * 3.0
    ref = _softplus_math(x, beta)

    # Default call: tiny input -> fused jnp fast path.
    out = jax.block_until_ready(softplus_pallas(x, beta))
    assert out.shape == x.shape and out.dtype == x.dtype
    assert jnp.allclose(out, ref, atol=1e-5, rtol=1e-5)

    # Force the Pallas path on the same (small) input to verify the kernel.
    out_k = jax.block_until_ready(softplus_pallas(x, beta, small_input_bytes=0))
    assert jnp.allclose(out_k, ref, atol=1e-5, rtol=1e-5)

    # Multi-block grid (aligned, 512 KiB): exercises the tiled / parallel path.
    x2 = jax.random.normal(jax.random.PRNGKey(1), (8, 16, 32, 32),
                           dtype=jnp.float32)
    out2 = jax.block_until_ready(softplus_pallas(x2, beta))
    assert jnp.allclose(out2, _softplus_math(x2, beta), atol=1e-5, rtol=1e-5)

    # Non-128-divisible element count: exercises the prefix-kernel + jnp-tail
    # path (forced through the kernel despite being small).
    x3 = jax.random.normal(jax.random.PRNGKey(2), (2, 4, 33, 65),
                           dtype=jnp.float32)
    out3 = jax.block_until_ready(softplus_pallas(x3, beta, small_input_bytes=0))
    assert jnp.allclose(out3, _softplus_math(x3, beta), atol=1e-5, rtol=1e-5)

    # bf16 input: exercises dtype-scaled block sizing.
    x4 = jax.random.normal(jax.random.PRNGKey(3), (4, 8, 32, 32),
                           dtype=jnp.bfloat16)
    out4 = jax.block_until_ready(softplus_pallas(x4, beta, small_input_bytes=0))
    assert jnp.allclose(out4.astype(jnp.float32),
                        _softplus_math(x4, beta).astype(jnp.float32),
                        atol=2e-2, rtol=2e-2)

    print("KERNEL_OK")
</pallas_src>

<mosaic_0001>
module attributes {stable_mosaic.version = 11 : i64} {
  func.func @_softplus_kernel(%arg0: i32, %arg1: memref<16x128xf32, #tpu.memory_space<vmem>>, %arg2: memref<16x128xf32, #tpu.memory_space<vmem>>) attributes {dimension_semantics = [#tpu.dimension_semantics<parallel>], iteration_bounds = array<i64: 1>, scalar_prefetch = 0 : i64, scratch_operands = 0 : i64, tpu.core_type = #tpu.core_type<tc>, window_params = [{transform_indices = @transform_0, window_bounds = array<i64: 16, 128>}, {transform_indices = @transform_1, window_bounds = array<i64: 16, 128>}]} {
    %c0 = arith.constant 0 : index
    %c0_0 = arith.constant 0 : index
    %0 = vector.load %arg1[%c0, %c0_0] : memref<16x128xf32, #tpu.memory_space<vmem>>, vector<16x128xf32>
    %cst = arith.constant 2.000000e+00 : f32
    %1 = vector.broadcast %cst : f32 to vector<16x128xf32>
    %2 = arith.mulf %1, %0 : vector<16x128xf32>
    %3 = math.absf %2 : vector<16x128xf32>
    %cst_1 = arith.constant 0.000000e+00 : f32
    %4 = vector.broadcast %cst_1 : f32 to vector<16x128xf32>
    %5 = arith.subf %4, %3 : vector<16x128xf32>
    %6 = math.exp %5 : vector<16x128xf32>
    %7 = math.log1p %6 : vector<16x128xf32>
    %cst_2 = arith.constant 5.000000e-01 : f32
    %8 = vector.broadcast %cst_2 : f32 to vector<16x128xf32>
    %9 = arith.mulf %8, %7 : vector<16x128xf32>
    %cst_3 = arith.constant 0.000000e+00 : f32
    %10 = vector.broadcast %cst_3 : f32 to vector<16x128xf32>
    %11 = arith.maximumf %0, %10 : vector<16x128xf32>
    %12 = arith.addf %9, %11 : vector<16x128xf32>
    %c0_4 = arith.constant 0 : index
    %c0_5 = arith.constant 0 : index
    %13 = vector.load %arg2[%c0_4, %c0_5] : memref<16x128xf32, #tpu.memory_space<vmem>>, vector<16x128xf32>
    tpu.vector_store %arg2[%c0_4, %c0_5], %12 {strides = array<i32>} : memref<16x128xf32, #tpu.memory_space<vmem>>, vector<16x128xf32>,
    return
  }
  func.func @transform_0(%arg0: i32) -> (i32, i32) {
    %c0_i32 = arith.constant 0 : i32
    %c0_i32_0 = arith.constant 0 : i32
    return %arg0, %c0_i32 : i32, i32
  }
  func.func @transform_1(%arg0: i32) -> (i32, i32) {
    %c0_i32 = arith.constant 0 : i32
    %c0_i32_0 = arith.constant 0 : i32
    return %arg0, %c0_i32 : i32, i32
  }
}

</mosaic_0001>

<bundles_post_ra>
// kernel: tpu_custom_call.1
= control target key start
LH: loop header
LB: loop body
LE: loop exit
PB: predicated region body
PF: predicated region fallthrough
CT: control target
= control target key end

     0   :  { %6 = vsyncpa [#allocation3], 0  ;;  %s172_s0 = inlined_call_operand.hbm [shape: f32[16,128], index: 0, kind: input, shape index: {}]   ;;  %s173_s1 = inlined_call_operand.hbm [shape: f32[16,128], index: 1, kind: output, shape index: {}]  }
   0x1   :  { %7 = vsyncpa [#allocation4], 0  ;;  %s12_s8 = sshll.u32 %s172_s0, 4  ;;  %s146_s9 = smov [#allocation2]   ;;  %s13_s8 = int_to_ptr.hbm [resolvable:$true] %s12_s8 }
   0x2   :  { %s14_s10 = sshll.u32 %s146_s9, 4  ;;  %s147_s11 = smov 128   ;;  %s15_s10 = int_to_ptr.vmem [resolvable:$true] %s14_s10 }
   0x3   :  { %s148_s12 = smov 8  }
   0x4   :  { %20 = dma.hbm_to_vmem [thread:$0]  %s13_s8, 256, %s15_s10, [#allocation3], %s147_s11, %s147_s11, %s148_s12  }
   0x5   :  { %142 = dma.done.wait [#allocation3], 256  }
   0x6   :  { %143 = vsyncadd [#allocation3], 4294967040  ;;  %v25_v0 = vld [vmem:[#allocation2] sm:$0xff]  ;;  %v26_v1 = vld [vmem:[#allocation2 + $0x8] sm:$0xff]  ;;  %s149_s0 = smov [#allocation5]   ;;  %s69_s16 = sshll.u32 %s173_s1, 4  ;;  %s70_s16 = int_to_ptr.hbm [resolvable:$true] %s69_s16 }
   0x7   :  { %v27_v2 = vmul.f32 2.0, %v25_v0  ;;  %v28_v3 = vmul.f32 2.0, %v26_v1  ;;  %v57_v25 = vmax.f32 %v25_v0, 0.0  ;;  %v58_v28 = vmax.f32 %v26_v1, 0.0  ;;  %s67_s13 = sshll.u32 %s149_s0, 4  ;;  %s68_s13 = int_to_ptr.vmem [resolvable:$true] %s67_s13 }
   0x9   :  { %v29_v4 = vand.u32 2147483647, %v27_v2  ;;  %v30_v5 = vand.u32 2147483647, %v28_v3 }
   0xb   :  { %v31_v6 = vsub.f32 0.0, %v29_v4  ;;  %v32_v7 = vsub.f32 0.0, %v30_v5 }
   0xd   :  { %v33_v8 = vmul.f32 1.442695, %v31_v6  ;;  %v35_v9 = vmul.f32 1.442695, %v32_v7 }
   0xf   :  { %86 = vpow2.f32 %v33_v8 }
  0x10   :  { %88 = vpow2.f32 %v35_v9 }
  0x15   :  { %v87_v10 = vpop.eup %86 }
  0x16   :  { %v89_v11 = vpop.eup %88  ;;  %v37_v12 = vadd.f32 1.0, %v87_v10  ;;  %v40_v13 = vmul.f32 -0.5, %v87_v10  ;;  %v43_v17 = vand.u32 2147483647, %v87_v10 }
  0x17   :  { %v46_v14 = vadd.f32 1.0, %v89_v11  ;;  %v49_v15 = vmul.f32 -0.5, %v89_v11  ;;  %v52_v19 = vand.u32 2147483647, %v89_v11 }
  0x18   :  { %90 = vlog2.f32 %v37_v12  ;;  %v41_v16 = vadd.f32 1.0, %v40_v13  ;;  %vm44_vm0 = vcmp.lt.f32.partialorder %v43_v17, 0.0004427343 }
  0x19   :  { %92 = vlog2.f32 %v46_v14  ;;  %v50_v18 = vadd.f32 1.0, %v49_v15  ;;  %vm53_vm1 = vcmp.lt.f32.partialorder %v52_v19, 0.0004427343 }
  0x1a   :  { %v42_v20 = vmul.f32 %v87_v10, %v41_v16 }
  0x1b   :  { %v51_v22 = vmul.f32 %v89_v11, %v50_v18 }
  0x1e   :  { %v91_v21 = vpop.eup %90 }
  0x1f   :  { %v93_v23 = vpop.eup %92  ;;  %v39_v24 = vmul.f32 0.6931472, %v91_v21 }
  0x20   :  { %v48_v26 = vmul.f32 0.6931472, %v93_v23 }
  0x21   :  { %v45_v27 = vsel %vm44_vm0, %v42_v20, %v39_v24 }
  0x22   :  { %v55_v29 = vmul.f32 0.5, %v45_v27  ;;  %v54_v30 = vsel %vm53_vm1, %v51_v22, %v48_v26 }
  0x23   :  { %v56_v31 = vmul.f32 0.5, %v54_v30 }
  0x24   :  { %v59_v32 = vadd.f32 %v57_v25, %v55_v29 }
  0x25   :  { %v60_v33 = vadd.f32 %v58_v28, %v56_v31 }
  0x26   :  { %61 = vst [vmem:[#allocation5] sm:$0xff] %v59_v32 }
  0x27   :  { %62 = vst [vmem:[#allocation5 + $0x8] sm:$0xff] %v60_v33 }
  0x28   :  { %75 = dma.vmem_to_hbm [thread:$0]  %s68_s13, 256, %s70_s16, [#allocation4], %s147_s11, %s147_s11, %s148_s12  }
  0x29   :  { %144 = dma.done.wait [#allocation4], 256  }
  0x2a   :  { %145 = vsyncadd [#allocation4], 4294967040 }
  0x2b   :  { %80 = vsyncpa [#allocation3], 1 }
  0x2c   :  { %81 = vsyncpa [#allocation4], 1 }

</bundles_post_ra>
